<compile_context>
chip_gen: v5e
topology: v5e:2x2
jax: 0.10.0
libtpu: 0.0.40
codegen_flags: <defaults>
</compile_context>

<pallas_src>
import math
import functools

import jax
import jax.numpy as jnp
from jax.experimental import pallas as pl
from jax.experimental.pallas import tpu as pltpu


# Explicit VMEM budget: above the 32 MiB scoped default, still comfortably
# inside v7x's 64 MiB physical VMEM (and v5e/v6e's 128 MiB).
VMEM_LIMIT_BYTES = 48 * 1024 * 1024


# ---------------------------------------------------------------------------
# GEMM kernel:  y = x @ W + b   (bf16 MXU inputs, f32 accumulation)
# ---------------------------------------------------------------------------
def _linear_kernel(x_ref, w_ref, b_ref, o_ref):
    x = x_ref[...].astype(jnp.bfloat16)
    acc = jnp.dot(x, w_ref[...], preferred_element_type=jnp.float32)
    o_ref[...] = (acc + b_ref[...]).astype(o_ref.dtype)


def linear_pallas(x2d, w_bf16, b_row, *, block_m=256):
    M, K = x2d.shape
    N = w_bf16.shape[1]
    tm = min(block_m, M)
    grid = (pl.cdiv(M, tm),)
    # TODO(synk): W/b have constant index maps; single-buffering them
    # (pipeline_mode) would halve their VMEM footprint at large H.
    return pl.pallas_call(
        _linear_kernel,
        out_shape=jax.ShapeDtypeStruct((M, N), x2d.dtype),
        grid_spec=pltpu.PrefetchScalarGridSpec(
            num_scalar_prefetch=0,
            grid=grid,
            in_specs=[
                pl.BlockSpec((tm, K), lambda i: (i, 0)),   # activation rows
                pl.BlockSpec((K, N), lambda i: (0, 0)),    # weight (bf16)
                pl.BlockSpec((1, N), lambda i: (0, 0)),    # bias row (f32)
            ],
            out_specs=pl.BlockSpec((tm, N), lambda i: (i, 0)),
        ),
        compiler_params=pltpu.CompilerParams(
            dimension_semantics=("parallel",),
            vmem_limit_bytes=VMEM_LIMIT_BYTES),
    )(x2d, w_bf16, b_row)


# ---------------------------------------------------------------------------
# Attention kernel: one (batch*head, query-tile) grid step.
# ---------------------------------------------------------------------------
def _attn_kernel(q_ref, k_ref, v_ref, o_ref, *, scale):
    # Fold the softmax scale into q (touches TQ*hd elements, not TQ*T scores).
    q = (q_ref[0] * scale).astype(jnp.bfloat16)        # (TQ, hd)
    k = k_ref[0].astype(jnp.bfloat16)                  # (T,  hd)
    v = v_ref[0].astype(jnp.bfloat16)                  # (T,  hd)

    # q @ k^T without materializing a transpose: contract the last dims.
    s = jax.lax.dot_general(q, k, (((1,), (1,)), ((), ())),
                            preferred_element_type=jnp.float32)    # (TQ, T)

    # Numerically-stable softmax kept in f32; divide goes to the EUP.
    m = jnp.max(s, axis=-1, keepdims=True)
    p = jnp.exp(s - m)
    l = jnp.sum(p, axis=-1, keepdims=True)
    p = p * pl.reciprocal(l, approx=True)

    # TODO(synk): optional attention mask not implemented (mask=None path);
    # dropout is eval-mode identity.
    ctx = jnp.dot(p.astype(jnp.bfloat16), v,
                  preferred_element_type=jnp.float32)              # (TQ, hd)
    o_ref[0] = ctx.astype(o_ref.dtype)


def attention_pallas(q, k, v, *, scale, block_q=256):
    BH, T, hd = q.shape
    tq = min(block_q, T)
    grid = (BH, pl.cdiv(T, tq))
    # TODO(synk): for very long T, add a KV-tile inner loop with online
    # softmax (flash-style) so the (TQ, T) score tile is bounded as well.
    return pl.pallas_call(
        functools.partial(_attn_kernel, scale=scale),
        out_shape=jax.ShapeDtypeStruct((BH, T, hd), q.dtype),
        grid_spec=pltpu.PrefetchScalarGridSpec(
            num_scalar_prefetch=0,
            grid=grid,
            in_specs=[
                pl.BlockSpec((1, tq, hd), lambda bh, qi: (bh, qi, 0)),  # Q tile
                pl.BlockSpec((1, T, hd), lambda bh, qi: (bh, 0, 0)),    # K full
                pl.BlockSpec((1, T, hd), lambda bh, qi: (bh, 0, 0)),    # V full
            ],
            out_specs=pl.BlockSpec((1, tq, hd), lambda bh, qi: (bh, qi, 0)),
        ),
        compiler_params=pltpu.CompilerParams(
            dimension_semantics=("parallel", "parallel"),
            vmem_limit_bytes=VMEM_LIMIT_BYTES),
    )(q, k, v)


# ---------------------------------------------------------------------------
# Full module forward (matches PyTorch MultiHeadSelfAttention.forward, eval).
# ---------------------------------------------------------------------------
def multi_head_self_attention(x, w_qkv, b_qkv, w_out, b_out, *, num_heads,
                              block_m=256, block_q=256):
    B, T, H = x.shape
    assert H % num_heads == 0
    hd = H // num_heads
    scale = 1.0 / math.sqrt(hd)

    # bf16 weights for the MXU; accumulation stays f32 inside the kernels.
    w_qkv_bf = w_qkv.astype(jnp.bfloat16)
    w_out_bf = w_out.astype(jnp.bfloat16)

    # 1) QKV projection over all B*T rows at once (big M for the MXU).
    x2 = x.reshape(B * T, H)
    qkv = linear_pallas(x2, w_qkv_bf, b_qkv.reshape(1, 3 * H), block_m=block_m)

    # Head split happens outside the kernels (plain XLA relayout), keeping the
    # Pallas kernels free of non-128-aligned column slices / concatenates.
    qkv = qkv.reshape(B, T, 3, num_heads, hd)
    q, k, v = (jnp.transpose(qkv[:, :, i], (0, 2, 1, 3))
               .reshape(B * num_heads, T, hd) for i in range(3))

    # 2) Per-(batch, head) scaled-dot attention, query-tiled.
    ctx = attention_pallas(q, k, v, scale=scale, block_q=block_q)

    # 3) Merge heads, then the output projection over all B*T rows.
    ctx = ctx.reshape(B, num_heads, T, hd).transpose(0, 2, 1, 3).reshape(B * T, H)
    out = linear_pallas(ctx, w_out_bf, b_out.reshape(1, H), block_m=block_m)
    return out.reshape(B, T, H)


# ---------------------------------------------------------------------------
# Pure-JAX f32 reference (mirrors the PyTorch module in eval mode, mask=None).
# ---------------------------------------------------------------------------
def reference(x, w_qkv, b_qkv, w_out, b_out, *, num_heads):
    B, T, H = x.shape
    hd = H // num_heads
    qkv = x @ w_qkv + b_qkv                               # (B, T, 3H)
    qkv = qkv.reshape(B, T, 3, num_heads, hd)
    q, k, v = qkv[:, :, 0], qkv[:, :, 1], qkv[:, :, 2]    # (B, T, nh, hd)
    q, k, v = (jnp.transpose(z, (0, 2, 1, 3)) for z in (q, k, v))
    scores = jnp.einsum("bhqd,bhkd->bhqk", q, k) / math.sqrt(hd)
    attn = jax.nn.softmax(scores, axis=-1)
    ctx = jnp.einsum("bhqk,bhkd->bhqd", attn, v)
    ctx = jnp.transpose(ctx, (0, 2, 1, 3)).reshape(B, T, H)
    return ctx @ w_out + b_out


if __name__ == "__main__":
    B, T, H = 2, 8, 32
    num_heads = 4

    key = jax.random.PRNGKey(0)
    kx, k1, k2, k3, k4 = jax.random.split(key, 5)

    x = jax.random.normal(kx, (B, T, H), dtype=jnp.float32)
    bound = 1.0 / math.sqrt(H)
    w_qkv = jax.random.uniform(k1, (H, 3 * H), jnp.float32, -bound, bound)
    b_qkv = jax.random.uniform(k2, (3 * H,), jnp.float32, -bound, bound)
    w_out = jax.random.uniform(k3, (H, H), jnp.float32, -bound, bound)
    b_out = jax.random.uniform(k4, (H,), jnp.float32, -bound, bound)

    fwd = jax.jit(functools.partial(multi_head_self_attention,
                                    num_heads=num_heads))
    out = jax.block_until_ready(fwd(x, w_qkv, b_qkv, w_out, b_out))

    ref = reference(x, w_qkv, b_qkv, w_out, b_out, num_heads=num_heads)
    assert out.shape == (B, T, H)
    # Loosened tolerance: bf16 MXU operands (f32 accumulation) per the
    # performance review.
    assert jnp.all(jnp.isfinite(out))
    assert jnp.allclose(out, ref, atol=5e-2, rtol=5e-2), "mismatch vs reference"

    print("KERNEL_OK")
</pallas_src>

<mosaic_0001>
module attributes {stable_mosaic.version = 11 : i64} {
  func.func @_linear_kernel(%arg0: i32, %arg1: memref<16x32xf32, #tpu.memory_space<vmem>>, %arg2: memref<32x96xbf16, #tpu.memory_space<vmem>>, %arg3: memref<1x96xf32, #tpu.memory_space<vmem>>, %arg4: memref<16x96xf32, #tpu.memory_space<vmem>>) attributes {dimension_semantics = [#tpu.dimension_semantics<parallel>], iteration_bounds = array<i64: 1>, scalar_prefetch = 0 : i64, scratch_operands = 0 : i64, tpu.core_type = #tpu.core_type<tc>, window_params = [{transform_indices = @transform_0, window_bounds = array<i64: 16, 32>}, {pipeline_mode = #tpu.pipeline_mode<synchronous>, transform_indices = @transform_1, window_bounds = array<i64: 32, 96>}, {pipeline_mode = #tpu.pipeline_mode<synchronous>, transform_indices = @transform_2, window_bounds = array<i64: 1, 96>}, {transform_indices = @transform_3, window_bounds = array<i64: 16, 96>}]} {
    %c0 = arith.constant 0 : index
    %c0_0 = arith.constant 0 : index
    %0 = vector.load %arg1[%c0, %c0_0] : memref<16x32xf32, #tpu.memory_space<vmem>>, vector<16x32xf32>
    %1 = arith.truncf %0 : vector<16x32xf32> to vector<16x32xbf16>
    %c0_1 = arith.constant 0 : index
    %c0_2 = arith.constant 0 : index
    %2 = vector.load %arg2[%c0_1, %c0_2] : memref<32x96xbf16, #tpu.memory_space<vmem>>, vector<32x96xbf16>
    %cst = arith.constant dense<0.000000e+00> : vector<16x96xf32>
    %3 = tpu.matmul %1, %2, %cst {dimension_numbers = #tpu.dot_dimension_numbers<[1], [0], [0], [1], [0, 0, 1, 1], [], []>} : vector<16x32xbf16>, vector<32x96xbf16>, vector<16x96xf32> -> vector<16x96xf32>
    %c0_3 = arith.constant 0 : index
    %c0_4 = arith.constant 0 : index
    %4 = vector.load %arg3[%c0_3, %c0_4] : memref<1x96xf32, #tpu.memory_space<vmem>>, vector<1x96xf32>
    %5 = vector.broadcast %4 : vector<1x96xf32> to vector<16x96xf32>
    %6 = arith.addf %3, %5 : vector<16x96xf32>
    %c0_5 = arith.constant 0 : index
    %c0_6 = arith.constant 0 : index
    %7 = vector.load %arg4[%c0_5, %c0_6] : memref<16x96xf32, #tpu.memory_space<vmem>>, vector<16x96xf32>
    tpu.vector_store %arg4[%c0_5, %c0_6], %6 {strides = array<i32>} : memref<16x96xf32, #tpu.memory_space<vmem>>, vector<16x96xf32>,
    return
  }
  func.func @transform_0(%arg0: i32) -> (i32, i32) {
    %c0_i32 = arith.constant 0 : i32
    %c0_i32_0 = arith.constant 0 : i32
    return %arg0, %c0_i32 : i32, i32
  }
  func.func @transform_1(%arg0: i32) -> (i32, i32) {
    %c0_i32 = arith.constant 0 : i32
    %c0_i32_0 = arith.constant 0 : i32
    %c0_i32_1 = arith.constant 0 : i32
    return %c0_i32, %c0_i32_0 : i32, i32
  }
  func.func @transform_2(%arg0: i32) -> (i32, i32) {
    %c0_i32 = arith.constant 0 : i32
    %c0_i32_0 = arith.constant 0 : i32
    %c0_i32_1 = arith.constant 0 : i32
    return %c0_i32, %c0_i32_0 : i32, i32
  }
  func.func @transform_3(%arg0: i32) -> (i32, i32) {
    %c0_i32 = arith.constant 0 : i32
    %c0_i32_0 = arith.constant 0 : i32
    return %arg0, %c0_i32 : i32, i32
  }
}

module attributes {stable_mosaic.version = 11 : i64} {
  func.func @_attn_kernel(%arg0: i32, %arg1: i32, %arg2: memref<1x8x8xf32, #tpu.memory_space<vmem>>, %arg3: memref<1x8x8xf32, #tpu.memory_space<vmem>>, %arg4: memref<1x8x8xf32, #tpu.memory_space<vmem>>, %arg5: memref<1x8x8xf32, #tpu.memory_space<vmem>>) attributes {dimension_semantics = [#tpu.dimension_semantics<parallel>, #tpu.dimension_semantics<parallel>], iteration_bounds = array<i64: 8, 1>, scalar_prefetch = 0 : i64, scratch_operands = 0 : i64, tpu.core_type = #tpu.core_type<tc>, window_params = [{transform_indices = @transform_0, window_bounds = array<i64: 1, 8, 8>}, {transform_indices = @transform_1, window_bounds = array<i64: 1, 8, 8>}, {transform_indices = @transform_2, window_bounds = array<i64: 1, 8, 8>}, {transform_indices = @transform_3, window_bounds = array<i64: 1, 8, 8>}]} {
    %c0 = arith.constant 0 : index
    %c0_0 = arith.constant 0 : index
    %c0_1 = arith.constant 0 : index
    %0 = vector.load %arg2[%c0, %c0_0, %c0_1] : memref<1x8x8xf32, #tpu.memory_space<vmem>>, vector<1x8x8xf32>
    %1 = vector.shape_cast %0 : vector<1x8x8xf32> to vector<8x8xf32>
    %cst = arith.constant 0.353553385 : f32
    %2 = vector.broadcast %cst : f32 to vector<8x8xf32>
    %3 = arith.mulf %1, %2 : vector<8x8xf32>
    %4 = arith.truncf %3 : vector<8x8xf32> to vector<8x8xbf16>
    %c0_2 = arith.constant 0 : index
    %c0_3 = arith.constant 0 : index
    %c0_4 = arith.constant 0 : index
    %5 = vector.load %arg3[%c0_2, %c0_3, %c0_4] : memref<1x8x8xf32, #tpu.memory_space<vmem>>, vector<1x8x8xf32>
    %6 = vector.shape_cast %5 : vector<1x8x8xf32> to vector<8x8xf32>
    %7 = arith.truncf %6 : vector<8x8xf32> to vector<8x8xbf16>
    %c0_5 = arith.constant 0 : index
    %c0_6 = arith.constant 0 : index
    %c0_7 = arith.constant 0 : index
    %8 = vector.load %arg4[%c0_5, %c0_6, %c0_7] : memref<1x8x8xf32, #tpu.memory_space<vmem>>, vector<1x8x8xf32>
    %9 = vector.shape_cast %8 : vector<1x8x8xf32> to vector<8x8xf32>
    %10 = arith.truncf %9 : vector<8x8xf32> to vector<8x8xbf16>
    %cst_8 = arith.constant dense<0.000000e+00> : vector<8x8xf32>
    %11 = tpu.matmul %4, %7, %cst_8 {dimension_numbers = #tpu.dot_dimension_numbers<[1], [1], [0], [0], [0, 0, 1, 0], [], []>} : vector<8x8xbf16>, vector<8x8xbf16>, vector<8x8xf32> -> vector<8x8xf32>
    %cst_9 = arith.constant dense<0xFF800000> : vector<8xf32>
    %12 = vector.multi_reduction <maximumf>, %11, %cst_9 [1] : vector<8x8xf32> to vector<8xf32>
    %13 = vector.shape_cast %12 : vector<8xf32> to vector<8x1xf32>
    %14 = vector.broadcast %13 : vector<8x1xf32> to vector<8x8xf32>
    %15 = arith.subf %11, %14 : vector<8x8xf32>
    %16 = math.exp %15 : vector<8x8xf32>
    %cst_10 = arith.constant dense<0.000000e+00> : vector<8xf32>
    %17 = vector.multi_reduction <add>, %16, %cst_10 [1] : vector<8x8xf32> to vector<8xf32>
    %18 = vector.shape_cast %17 : vector<8xf32> to vector<8x1xf32>
    %19 = tpu.reciprocal %18 {approx = true} : vector<8x1xf32> -> vector<8x1xf32>
    %20 = vector.broadcast %19 : vector<8x1xf32> to vector<8x8xf32>
    %21 = arith.mulf %16, %20 : vector<8x8xf32>
    %22 = arith.truncf %21 : vector<8x8xf32> to vector<8x8xbf16>
    %cst_11 = arith.constant dense<0.000000e+00> : vector<8x8xf32>
    %23 = tpu.matmul %22, %10, %cst_11 {dimension_numbers = #tpu.dot_dimension_numbers<[1], [0], [0], [1], [0, 0, 1, 1], [], []>} : vector<8x8xbf16>, vector<8x8xbf16>, vector<8x8xf32> -> vector<8x8xf32>
    %c0_12 = arith.constant 0 : index
    %c0_13 = arith.constant 0 : index
    %c0_14 = arith.constant 0 : index
    %24 = vector.load %arg5[%c0_12, %c0_13, %c0_14] : memref<1x8x8xf32, #tpu.memory_space<vmem>>, vector<1x8x8xf32>
    %25 = vector.shape_cast %24 : vector<1x8x8xf32> to vector<8x8xf32>
    %26 = vector.shape_cast %23 : vector<8x8xf32> to vector<1x8x8xf32>
    tpu.vector_store %arg5[%c0_12, %c0_13, %c0_14], %26 {strides = array<i32>} : memref<1x8x8xf32, #tpu.memory_space<vmem>>, vector<1x8x8xf32>,
    return
  }
  func.func @transform_0(%arg0: i32, %arg1: i32) -> (i32, i32, i32) {
    %c0_i32 = arith.constant 0 : i32
    %c0_i32_0 = arith.constant 0 : i32
    return %arg0, %arg1, %c0_i32 : i32, i32, i32
  }
  func.func @transform_1(%arg0: i32, %arg1: i32) -> (i32, i32, i32) {
    %c0_i32 = arith.constant 0 : i32
    %c0_i32_0 = arith.constant 0 : i32
    %c0_i32_1 = arith.constant 0 : i32
    return %arg0, %c0_i32, %c0_i32_0 : i32, i32, i32
  }
  func.func @transform_2(%arg0: i32, %arg1: i32) -> (i32, i32, i32) {
    %c0_i32 = arith.constant 0 : i32
    %c0_i32_0 = arith.constant 0 : i32
    %c0_i32_1 = arith.constant 0 : i32
    return %arg0, %c0_i32, %c0_i32_0 : i32, i32, i32
  }
  func.func @transform_3(%arg0: i32, %arg1: i32) -> (i32, i32, i32) {
    %c0_i32 = arith.constant 0 : i32
    %c0_i32_0 = arith.constant 0 : i32
    return %arg0, %arg1, %c0_i32 : i32, i32, i32
  }
}

module attributes {stable_mosaic.version = 11 : i64} {
  func.func @_linear_kernel(%arg0: i32, %arg1: memref<16x32xf32, #tpu.memory_space<vmem>>, %arg2: memref<32x32xbf16, #tpu.memory_space<vmem>>, %arg3: memref<1x32xf32, #tpu.memory_space<vmem>>, %arg4: memref<16x32xf32, #tpu.memory_space<vmem>>) attributes {dimension_semantics = [#tpu.dimension_semantics<parallel>], iteration_bounds = array<i64: 1>, scalar_prefetch = 0 : i64, scratch_operands = 0 : i64, tpu.core_type = #tpu.core_type<tc>, window_params = [{transform_indices = @transform_0, window_bounds = array<i64: 16, 32>}, {pipeline_mode = #tpu.pipeline_mode<synchronous>, transform_indices = @transform_1, window_bounds = array<i64: 32, 32>}, {pipeline_mode = #tpu.pipeline_mode<synchronous>, transform_indices = @transform_2, window_bounds = array<i64: 1, 32>}, {transform_indices = @transform_3, window_bounds = array<i64: 16, 32>}]} {
    %c0 = arith.constant 0 : index
    %c0_0 = arith.constant 0 : index
    %0 = vector.load %arg1[%c0, %c0_0] : memref<16x32xf32, #tpu.memory_space<vmem>>, vector<16x32xf32>
    %1 = arith.truncf %0 : vector<16x32xf32> to vector<16x32xbf16>
    %c0_1 = arith.constant 0 : index
    %c0_2 = arith.constant 0 : index
    %2 = vector.load %arg2[%c0_1, %c0_2] : memref<32x32xbf16, #tpu.memory_space<vmem>>, vector<32x32xbf16>
    %cst = arith.constant dense<0.000000e+00> : vector<16x32xf32>
    %3 = tpu.matmul %1, %2, %cst {dimension_numbers = #tpu.dot_dimension_numbers<[1], [0], [0], [1], [0, 0, 1, 1], [], []>} : vector<16x32xbf16>, vector<32x32xbf16>, vector<16x32xf32> -> vector<16x32xf32>
    %c0_3 = arith.constant 0 : index
    %c0_4 = arith.constant 0 : index
    %4 = vector.load %arg3[%c0_3, %c0_4] : memref<1x32xf32, #tpu.memory_space<vmem>>, vector<1x32xf32>
    %5 = vector.broadcast %4 : vector<1x32xf32> to vector<16x32xf32>
    %6 = arith.addf %3, %5 : vector<16x32xf32>
    %c0_5 = arith.constant 0 : index
    %c0_6 = arith.constant 0 : index
    %7 = vector.load %arg4[%c0_5, %c0_6] : memref<16x32xf32, #tpu.memory_space<vmem>>, vector<16x32xf32>
    tpu.vector_store %arg4[%c0_5, %c0_6], %6 {strides = array<i32>} : memref<16x32xf32, #tpu.memory_space<vmem>>, vector<16x32xf32>,
    return
  }
  func.func @transform_0(%arg0: i32) -> (i32, i32) {
    %c0_i32 = arith.constant 0 : i32
    %c0_i32_0 = arith.constant 0 : i32
    return %arg0, %c0_i32 : i32, i32
  }
  func.func @transform_1(%arg0: i32) -> (i32, i32) {
    %c0_i32 = arith.constant 0 : i32
    %c0_i32_0 = arith.constant 0 : i32
    %c0_i32_1 = arith.constant 0 : i32
    return %c0_i32, %c0_i32_0 : i32, i32
  }
  func.func @transform_2(%arg0: i32) -> (i32, i32) {
    %c0_i32 = arith.constant 0 : i32
    %c0_i32_0 = arith.constant 0 : i32
    %c0_i32_1 = arith.constant 0 : i32
    return %c0_i32, %c0_i32_0 : i32, i32
  }
  func.func @transform_3(%arg0: i32) -> (i32, i32) {
    %c0_i32 = arith.constant 0 : i32
    %c0_i32_0 = arith.constant 0 : i32
    return %arg0, %c0_i32 : i32, i32
  }
}

</mosaic_0001>

<bundles_post_ra>
// kernel: multi_head_self_attention.3
= control target key start
LH: loop header
LB: loop body
LE: loop exit
PB: predicated region body
PF: predicated region fallthrough
CT: control target
= control target key end

     0   :  { %vm38_vm0 = vcmask 261120   ;;  %vm56_vm1 = vcmask 785408   ;;  %s116_s1 = inlined_call_operand.vmem [shape: bf16[32,96], index: 1, kind: input, shape index: {}]   ;;  %s117_s0 = inlined_call_operand.vmem [shape: f32[16,32], index: 0, kind: input, shape index: {}]   ;;  %s118_s2 = inlined_call_operand.vmem [shape: f32[1,96], index: 2, kind: input, shape index: {}]   ;;  %s119_s3 = inlined_call_operand.vmem [shape: f32[16,96], index: 3, kind: output, shape index: {}]  }
   0x1   :  { %v73_v0 = vld [vmem:[%s116_s1 + $0x8] sm:$0xff]  ;;  %v72_v1 = vld [vmem:[%s116_s1] sm:$0xff] }
   0x2   :  { %48 = vmatpush.bf16.msra.mxu0 %v73_v0  ;;  %v15_v2 = vld [vmem:[%s117_s0] sm:$0xff]  ;;  %v16_v3 = vld [vmem:[%s117_s0 + $0x8] sm:$0xff] }
   0x3   :  { %v17_v4 = vpack.c.bf16 %v16_v3, %v15_v2  ;;  %v74_v5 = vld [vmem:[%s118_s2] ss:$0 sm:$0xff] }
   0x6   :  { %49 = vmatpush.bf16.msra.mxu0 %v72_v1 }
   0x9   :  { %71 = vmatmul.msk.bf16.vlgmr.msra.gmra.mxu0 %vm38_vm0, %v17_v4 }
  0x86   :  { %v51_v6 = vpop.f32.mrf.mxu0 }
  0x87   :  { %v52_v7 = vadd.f32 %v74_v5, %v51_v6 }
  0x89   :  { %57 = vst.msk [vmem:[%s119_s3] sm:$0xff] %vm56_vm1, %v52_v7 }
  0x8e   :  { %v53_v8 = vpop.f32.mrf.mxu0 }
  0x8f   :  { %v54_v9 = vadd.f32 %v74_v5, %v53_v8 }
  0x91   :  { %58 = vst.msk [vmem:[%s119_s3 + $0x8] sm:$0xff] %vm56_vm1, %v54_v9 }

// kernel: multi_head_self_attention.4
= control target key start
LH: loop header
LB: loop body
LE: loop exit
PB: predicated region body
PF: predicated region fallthrough
CT: control target
= control target key end

     0   :  { %s475_s12 = smov 0   ;;  %s477_s13 = smov 0   ;;  %s526_s0 = inlined_call_operand.vmem [shape: f32[8,8,8], index: 0, kind: input, shape index: {}]   ;;  %s527_s1 = inlined_call_operand.vmem [shape: f32[8,8,8], index: 1, kind: input, shape index: {}]   ;;  %s528_s2 = inlined_call_operand.vmem [shape: f32[8,8,8], index: 2, kind: input, shape index: {}]   ;;  %s529_s3 = inlined_call_operand.vmem [shape: f32[8,8,8], index: 3, kind: output, shape index: {}]  }
   0x1   :  { %s479_s14 = smov 0  }
   0x2 LB: > { %s25_s15 = sadd.s32 1, %s449_s13  ;;  %p394_p0 = scmp.ge.s32.totalorder %s453_s14, 1  ;;  %s453_s14 = sphi %s479_s14, %s13_s14   ;;  %s449_s13 = sphi %s477_s13, %s531_s13   ;;  %s445_s12 = sphi %s475_s12, %s530_s12  }
   0x3   : > { %p27_p1 = scmp.ge.s32.totalorder %s25_s15, 8  ;;  %p173_p2 = scmp.lt.s32.totalorder %s453_s14, 9 }
   0x5   : > { %s533_s15 = smov (%p27_p1, %s25_s15), 0  ;;  %p174_p3 = pnand %p394_p0, %p173_p2 }
   0x6   : > { %p209_p4 = scmp.lt.s32.totalorder (!%p174_p3), %s445_s12, 7 }
   0x7   : > { %177 = sbr.rel (%p174_p3) target bundleno = 542 (0x21e), region = 32 }
   0xc   : > { %s535_s12 = smov (!%p209_p4, %s445_s12), 7  ;;  %vm239_vm0 = vcmask 64512   ;;  %vm274_vm1 = vcmask 1043456  }
   0xd   : > { %s493_s16 = sshll.u32 %s535_s12, 3 }
   0xe   : > { %s219_s19 = scalar_lea.vmem %s527_s1, %s493_s16  ;;  %s215_s22 = scalar_lea.vmem %s526_s0, %s493_s16 }
   0xf   : > { %v235_v0 = vld [vmem:[%s219_s19] sm:$0xff]  ;;  %s223_s25 = scalar_lea.vmem %s528_s2, %s493_s16  ;;  %s230_s28 = scalar_lea.vmem %s529_s3, %s493_s16 }
  0x10   : > { %v232_v1 = vld [vmem:[%s215_s22] sm:$0xff]  ;;  %v236_v2 = vpack.c.bf16 %v235_v0, %v235_v0 }
  0x11   : > { %v233_v4 = vmul.f32 0.35355338, %v232_v1  ;;  %v237_v14 = vld [vmem:[%s223_s25] sm:$0xff] }
  0x12   : > { %v244_v3 = vsel %vm239_vm0, %v236_v2, 0  ;;  %v238_v15 = vpack.c.bf16 %v237_v14, %v237_v14 }
  0x13   : > { %253 = vmatpush.bf16.xpose.msra.mxu0 %v244_v3  ;;  %v234_v5 = vpack.c.bf16 %v233_v4, %v233_v4 }
  0x14   : > { %v276_v16 = vsel %vm274_vm1, %v238_v15, 0 }
  0x15   : > { %285 = vmatpush.bf16.msra.mxu1 %v276_v16 }
  0x1a   : > { %399 = vmatmul.msk.bf16.vlgmr.msra.gmra.mxu0 %vm239_vm0, %v234_v5 }
  0x97   : > { %v255_v6 = vpop.f32.mrf.mxu0 }
  0x98   : > { %v259_v7 = vsel %vm239_vm0, %v255_v6, -inf }
  0x99   : > { %260 = vmax.xlane.f32.xlu0 %v259_v7 }
  0x9f   : > { %v257_v8 = vpop.f32.mrf.mxu0 }
 0x10c   : > { %v261_v9 = vpop.xlane.xlu0 %260 }
 0x10d   : > { %v262_v10 = vsub.f32 %v255_v6, %v261_v9 }
 0x10f   : > { %v263_v11 = vmul.f32 1.442695, %v262_v10 }
 0x111   : > { %427 = vpow2.f32 %v263_v11 }
 0x117   : > { %v428_v12 = vpop.eup %427 }
 0x118   : > { %v265_v13 = vsel %vm239_vm0, %v428_v12, 0.0 }
 0x119   : > { %266 = vadd.xlane.f32.xlu0 %v265_v13 }
 0x18c   : > { %v267_v17 = vpop.xlane.xlu0 %266 }
 0x18d   : > { %429 = vrcp.f32 %v267_v17 }
 0x193   : > { %v430_v18 = vpop.eup %429 }
 0x194   : > { %v269_v19 = vmul.f32 %v430_v18, %v428_v12 }
 0x196   : > { %v270_v20 = vpack.c.bf16 %v269_v19, %v269_v19 }
 0x198   : > { %400 = vmatmul.msk.bf16.vlgmr.msra.gmra.mxu1 %vm239_vm0, %v270_v20 }
 0x215   : > { %v287_v21 = vpop.f32.mrf.mxu1 }
 0x216   : > { %291 = vst.msk [vmem:[%s230_s28] sm:$0xff] %vm239_vm0, %v287_v21 }
 0x21d   : > { %v289_v22 = vpop.f32.mrf.mxu1 }
 0x21e PF: > { %s13_s14 = sadd.s32 1, %s453_s14   ;;  %s530_s12 = smov %s449_s13 }
 0x21f   : > { %p10_p5 = scmp.ge.s32.totalorder %s13_s14, 10   ;;  %s531_s13 = smov %s533_s15 }
 0x221   :  { %12 = sbr.rel (!%p10_p5) target bundleno = 2 (0x2), region = 68 }

// kernel: multi_head_self_attention.5
= control target key start
LH: loop header
LB: loop body
LE: loop exit
PB: predicated region body
PF: predicated region fallthrough
CT: control target
= control target key end

     0   :  { %s159_s0 = inlined_call_operand.vmem [shape: f32[16,32], index: 0, kind: input, shape index: {}]   ;;  %s160_s1 = inlined_call_operand.vmem [shape: bf16[32,32], index: 1, kind: input, shape index: {}]   ;;  %s161_s2 = inlined_call_operand.vmem [shape: f32[1,32], index: 2, kind: input, shape index: {}]   ;;  %s162_s3 = inlined_call_operand.hbm [shape: f32[16,32], index: 3, kind: output, shape index: {}]  }
   0x1   :  { %v87_v0 = vld [vmem:[%s160_s1 + $0x8] sm:$0xff]  ;;  %v86_v1 = vld [vmem:[%s160_s1] sm:$0xff] }
   0x2   :  { %49 = vmatpush.bf16.msra.mxu0 %v87_v0  ;;  %v16_v2 = vld [vmem:[%s159_s0] sm:$0xff]  ;;  %v17_v3 = vld [vmem:[%s159_s0 + $0x8] sm:$0xff] }
   0x3   :  { %8 = vsyncpa [#allocation3], 0  ;;  %v18_v4 = vpack.c.bf16 %v17_v3, %v16_v2  ;;  %vm39_vm0 = vcmask 261120   ;;  %v91_v5 = vld [vmem:[%s161_s2] ss:$0 sm:$0xff]  ;;  %s118_s1 = smov [#allocation2]  }
   0x4   :  { %s63_s22 = sshll.u32 %s118_s1, 4  ;;  %s65_s25 = sshll.u32 %s162_s3, 4  ;;  %s64_s22 = int_to_ptr.vmem [resolvable:$true] %s63_s22  ;;  %s66_s25 = int_to_ptr.hbm [resolvable:$true] %s65_s25 }
   0x5   :  { %s119_s0 = smov 128   ;;  %s120_s26 = smov 8  }
   0x6   :  { %50 = vmatpush.bf16.msra.mxu0 %v86_v1 }
   0x9   :  { %85 = vmatmul.msk.bf16.vlgmr.msra.gmra.mxu0 %vm39_vm0, %v18_v4 }
  0x86   :  { %v52_v6 = vpop.f32.mrf.mxu0 }
  0x87   :  { %v53_v7 = vadd.f32 %v91_v5, %v52_v6 }
  0x89   :  { %57 = vst.msk [vmem:[#allocation2] sm:$0xff] %vm39_vm0, %v53_v7 }
  0x8e   :  { %v54_v8 = vpop.f32.mrf.mxu0 }
  0x8f   :  { %v55_v9 = vadd.f32 %v91_v5, %v54_v8 }
  0x91   :  { %58 = vst.msk [vmem:[#allocation2 + $0x8] sm:$0xff] %vm39_vm0, %v55_v9 }
  0x92   :  { %71 = dma.vmem_to_hbm [thread:$0]  %s64_s22, 256, %s66_s25, [#allocation3], %s119_s0, %s119_s0, %s120_s26  }
  0x93   :  { %116 = dma.done.wait [#allocation3], 256  }
  0x94   :  { %117 = vsyncadd [#allocation3], 4294967040 }
  0x95   :  { %76 = vsyncpa [#allocation3], 1 }

</bundles_post_ra>
